<compile_context>
chip_gen: v7x
topology: tpu7x:2x2x1
jax: 0.10.0
libtpu: 0.0.40
codegen_flags: <defaults>
</compile_context>

<pallas_src>
import functools
import math

import jax
import jax.numpy as jnp
from jax.experimental import pallas as pl
from jax.experimental.pallas import tpu as pltpu

LANE = 128
MAX_BLOCK_ROWS = 1024          # (1024, 128) f32 block = 512 KiB
_INV_LOG_100 = 1.0 / math.log(100.0)


def _sublane_rows(dtype):
    """Row-count granularity of one vreg tile for this dtype (8 for 32-bit)."""
    itemsize = jnp.dtype(dtype).itemsize
    return 8 * max(1, 4 // itemsize)


def _huber_kernel(yt_ref, yp_ref, out_ref, acc_ref, *,
                  delta, inv_n, rows_valid, block_rows, mask_rows):
    i = pl.program_id(0)

    @pl.when(i == 0)
    def _():
        acc_ref[...] = jnp.zeros_like(acc_ref)

    # Upcast on the loaded tile (free VPU op) instead of in the wrapper.
    yt = yt_ref[...].astype(jnp.float32)
    yp = yp_ref[...].astype(jnp.float32)

    # y_pred_mapped = where(y_pred > 20, 20 + log(y_pred - 20 + 1)/log(100), y_pred)
    # clamp the log argument so the un-selected branch never produces NaN/-inf,
    # and multiply by a precomputed 1/log(100) instead of dividing (halves EUP work).
    yp_mapped = jnp.where(
        yp > 20.0,
        20.0 + jnp.log(jnp.maximum(yp - 19.0, 1.0)) * _INV_LOG_100,
        yp,
    )
    error = jnp.abs(yt - yp_mapped)
    quadratic = 0.5 * error * error
    linear = delta * (error - 0.5 * delta)
    loss = jnp.where(error <= delta, quadratic, linear)

    if mask_rows:
        # Last grid block extends past the array: zero the out-of-bounds rows.
        row = jax.lax.broadcasted_iota(jnp.int32, loss.shape, 0)
        valid = (i * block_rows + row) < rows_valid
        loss = jnp.where(valid, loss, 0.0)

    # Vreg-shaped accumulation: pure elementwise VPU adds, no per-step XLU
    # cross-lane reduce and no SMEM scalar read-modify-write chain.
    acc_ref[...] += loss.reshape(block_rows // 8, 8, LANE).sum(axis=0)

    @pl.when(i == pl.num_programs(0) - 1)
    def _():
        # Single final cross-lane/sublane reduce + mean.
        out_ref[0, 0] = jnp.sum(acc_ref[...]) * inv_n


def huber_loss(y_true, y_pred, delta):
    """Huber loss with the log-compression of predictions > 20, mean-reduced."""
    assert y_true.shape == y_pred.shape
    n = int(y_true.size)

    yt = y_true.reshape(-1)
    yp = y_pred.reshape(-1)

    # Align the flat length to one vreg tile of rows so the (rows, LANE)
    # reshape is a free view and the block row-count is tile-aligned.
    sub = max(_sublane_rows(yt.dtype), _sublane_rows(yp.dtype))
    align = sub * LANE
    n_pad = pl.cdiv(n, align) * align
    pad = n_pad - n
    if pad:
        # Only hit when n is not already vreg-aligned (not the common case).
        # Zero padding contributes exactly 0 to the Huber sum.
        yt = jnp.pad(yt, (0, pad))
        yp = jnp.pad(yp, (0, pad))

    rows = n_pad // LANE                       # multiple of `sub` (>= 8)
    yt2 = yt.reshape(rows, LANE)               # free view (lane-dense)
    yp2 = yp.reshape(rows, LANE)

    block_rows = min(MAX_BLOCK_ROWS, rows)     # big block, still a multiple of 8
    num_blocks = pl.cdiv(rows, block_rows)
    mask_rows = (rows % block_rows) != 0       # static: mask only if last block partial

    kernel = functools.partial(
        _huber_kernel,
        delta=float(delta),
        inv_n=1.0 / float(n),
        rows_valid=rows,
        block_rows=block_rows,
        mask_rows=mask_rows,
    )

    out = pl.pallas_call(
        kernel,
        out_shape=jax.ShapeDtypeStruct((1, 1), jnp.float32),
        grid_spec=pltpu.PrefetchScalarGridSpec(
            num_scalar_prefetch=0,
            grid=(num_blocks,),
            in_specs=[
                pl.BlockSpec((block_rows, LANE), lambda i: (i, 0)),
                pl.BlockSpec((block_rows, LANE), lambda i: (i, 0)),
            ],
            out_specs=pl.BlockSpec(memory_space=pltpu.SMEM),
            scratch_shapes=[pltpu.VMEM((8, LANE), jnp.float32)],
        ),
        compiler_params=pltpu.CompilerParams(
            dimension_semantics=("arbitrary",),
        ),
    )(yt2, yp2)
    return out[0, 0]


def _huber_ref(y_true, y_pred, delta):
    # pure-JAX reference for verification
    yp = y_pred.astype(jnp.float32)
    yt = y_true.astype(jnp.float32)
    yp_mapped = jnp.where(
        yp > 20.0, 20.0 + jnp.log(yp - 20.0 + 1.0) / jnp.log(100.0), yp
    )
    error = jnp.abs(yt - yp_mapped)
    quadratic = 0.5 * error ** 2
    linear = delta * (error - 0.5 * delta)
    loss = jnp.where(error <= delta, quadratic, linear)
    return loss.mean()


if __name__ == "__main__":
    key = jax.random.PRNGKey(0)
    k1, k2 = jax.random.split(key)

    # small shapes consistent with a regression target tensor
    shape = (2, 4, 16, 16)
    delta = 1.0

    y_true = jax.random.normal(k1, shape, dtype=jnp.float32) * 10.0 + 10.0
    # make sure some predictions exceed 20 to exercise the log-mapping branch
    y_pred = jax.random.normal(k2, shape, dtype=jnp.float32) * 15.0 + 10.0

    out = huber_loss(y_true, y_pred, delta)
    out = jax.block_until_ready(out)

    ref = _huber_ref(y_true, y_pred, delta)
    assert jnp.allclose(out, ref, rtol=1e-5, atol=1e-5), (out, ref)

    print("KERNEL_OK")
</pallas_src>

<mosaic_0001>
module attributes {stable_mosaic.version = 11 : i64} {
  func.func @_huber_kernel(%arg0: i32, %arg1: memref<16x128xf32, #tpu.memory_space<vmem>>, %arg2: memref<16x128xf32, #tpu.memory_space<vmem>>, %arg3: memref<1x1xf32, #tpu.memory_space<smem>>, %arg4: memref<8x128xf32, #tpu.memory_space<vmem>>) attributes {dimension_semantics = [#tpu.dimension_semantics<arbitrary>], iteration_bounds = array<i64: 1>, scalar_prefetch = 0 : i64, scratch_operands = 1 : i64, tpu.core_type = #tpu.core_type<tc>, window_params = [{transform_indices = @transform_0, window_bounds = array<i64: 16, 128>}, {transform_indices = @transform_1, window_bounds = array<i64: 16, 128>}, {transform_indices = @transform_2, window_bounds = array<i64: 1, 1>}]} {
    %c0_i32 = arith.constant 0 : i32
    %0 = arith.cmpi eq, %arg0, %c0_i32 : i32
    %1 = arith.extui %0 : i1 to i32
    %c0_i32_0 = arith.constant 0 : i32
    %2 = arith.cmpi ne, %1, %c0_i32_0 : i32
    scf.if %2 {
      %cst_19 = arith.constant 0.000000e+00 : f32
      %37 = vector.broadcast %cst_19 : f32 to vector<8x128xf32>
      %c0_20 = arith.constant 0 : index
      %c0_21 = arith.constant 0 : index
      %38 = vector.load %arg4[%c0_20, %c0_21] : memref<8x128xf32, #tpu.memory_space<vmem>>, vector<8x128xf32>
      tpu.vector_store %arg4[%c0_20, %c0_21], %37 {strides = array<i32>} : memref<8x128xf32, #tpu.memory_space<vmem>>, vector<8x128xf32>,
    } else {
    }
    %c0 = arith.constant 0 : index
    %c0_1 = arith.constant 0 : index
    %3 = vector.load %arg1[%c0, %c0_1] : memref<16x128xf32, #tpu.memory_space<vmem>>, vector<16x128xf32>
    %c0_2 = arith.constant 0 : index
    %c0_3 = arith.constant 0 : index
    %4 = vector.load %arg2[%c0_2, %c0_3] : memref<16x128xf32, #tpu.memory_space<vmem>>, vector<16x128xf32>
    %cst = arith.constant 2.000000e+01 : f32
    %5 = vector.broadcast %cst : f32 to vector<16x128xf32>
    %6 = arith.cmpf ogt, %4, %5 : vector<16x128xf32>
    %cst_4 = arith.constant 1.900000e+01 : f32
    %7 = vector.broadcast %cst_4 : f32 to vector<16x128xf32>
    %8 = arith.subf %4, %7 : vector<16x128xf32>
    %cst_5 = arith.constant 1.000000e+00 : f32
    %9 = vector.broadcast %cst_5 : f32 to vector<16x128xf32>
    %10 = arith.maximumf %8, %9 : vector<16x128xf32>
    %11 = math.log %10 : vector<16x128xf32>
    %cst_6 = arith.constant 0.217147246 : f32
    %12 = vector.broadcast %cst_6 : f32 to vector<16x128xf32>
    %13 = arith.mulf %11, %12 : vector<16x128xf32>
    %cst_7 = arith.constant 2.000000e+01 : f32
    %14 = vector.broadcast %cst_7 : f32 to vector<16x128xf32>
    %15 = arith.addf %14, %13 : vector<16x128xf32>
    %16 = arith.select %6, %15, %4 : vector<16x128xi1>, vector<16x128xf32>
    %17 = arith.subf %3, %16 : vector<16x128xf32>
    %18 = math.absf %17 : vector<16x128xf32>
    %cst_8 = arith.constant 5.000000e-01 : f32
    %19 = vector.broadcast %cst_8 : f32 to vector<16x128xf32>
    %20 = arith.mulf %19, %18 : vector<16x128xf32>
    %21 = arith.mulf %20, %18 : vector<16x128xf32>
    %cst_9 = arith.constant 5.000000e-01 : f32
    %22 = vector.broadcast %cst_9 : f32 to vector<16x128xf32>
    %23 = arith.subf %18, %22 : vector<16x128xf32>
    %cst_10 = arith.constant 1.000000e+00 : f32
    %24 = vector.broadcast %cst_10 : f32 to vector<16x128xf32>
    %25 = arith.mulf %24, %23 : vector<16x128xf32>
    %cst_11 = arith.constant 1.000000e+00 : f32
    %26 = vector.broadcast %cst_11 : f32 to vector<16x128xf32>
    %27 = arith.cmpf ole, %18, %26 : vector<16x128xf32>
    %28 = arith.select %27, %21, %25 : vector<16x128xi1>, vector<16x128xf32>
    %c0_12 = arith.constant 0 : index
    %c0_13 = arith.constant 0 : index
    %29 = vector.load %arg4[%c0_12, %c0_13] : memref<8x128xf32, #tpu.memory_space<vmem>>, vector<8x128xf32>
    %30 = vector.shape_cast %28 : vector<16x128xf32> to vector<2x8x128xf32>
    %cst_14 = arith.constant dense<0.000000e+00> : vector<8x128xf32>
    %31 = vector.multi_reduction <add>, %30, %cst_14 [0] : vector<2x8x128xf32> to vector<8x128xf32>
    %32 = arith.addf %29, %31 : vector<8x128xf32>
    %c0_15 = arith.constant 0 : index
    %c0_16 = arith.constant 0 : index
    %33 = vector.load %arg4[%c0_15, %c0_16] : memref<8x128xf32, #tpu.memory_space<vmem>>, vector<8x128xf32>
    tpu.vector_store %arg4[%c0_15, %c0_16], %32 {strides = array<i32>} : memref<8x128xf32, #tpu.memory_space<vmem>>, vector<8x128xf32>,
    %c0_i32_17 = arith.constant 0 : i32
    %34 = arith.cmpi eq, %arg0, %c0_i32_17 : i32
    %35 = arith.extui %34 : i1 to i32
    %c0_i32_18 = arith.constant 0 : i32
    %36 = arith.cmpi ne, %35, %c0_i32_18 : i32
    scf.if %36 {
      %c0_19 = arith.constant 0 : index
      %c0_20 = arith.constant 0 : index
      %37 = vector.load %arg4[%c0_19, %c0_20] : memref<8x128xf32, #tpu.memory_space<vmem>>, vector<8x128xf32>
      %38 = vector.shape_cast %37 : vector<8x128xf32> to vector<1x8x128xf32>
      %cst_21 = arith.constant dense<0.000000e+00> : vector<1xf32>
      %39 = vector.multi_reduction <add>, %38, %cst_21 [1, 2] : vector<1x8x128xf32> to vector<1xf32>
      %40 = vector.shape_cast %39 : vector<1xf32> to vector<1x1x1xf32>
      %41 = vector.extract %40[0, 0, 0] : f32 from vector<1x1x1xf32>
      %cst_22 = arith.constant 4.8828125E-4 : f32
      %42 = arith.mulf %41, %cst_22 : f32
      %c0_23 = arith.constant 0 : index
      %c0_24 = arith.constant 0 : index
      %43 = memref.load %arg3[%c0_23, %c0_24] : memref<1x1xf32, #tpu.memory_space<smem>>
      memref.store %42, %arg3[%c0_23, %c0_24] : memref<1x1xf32, #tpu.memory_space<smem>>
    } else {
    }
    return
  }
  func.func @transform_0(%arg0: i32) -> (i32, i32) {
    %c0_i32 = arith.constant 0 : i32
    %c0_i32_0 = arith.constant 0 : i32
    return %arg0, %c0_i32 : i32, i32
  }
  func.func @transform_1(%arg0: i32) -> (i32, i32) {
    %c0_i32 = arith.constant 0 : i32
    %c0_i32_0 = arith.constant 0 : i32
    return %arg0, %c0_i32 : i32, i32
  }
  func.func @transform_2(%arg0: i32) -> (i32, i32) {
    %c0_i32 = arith.constant 0 : i32
    %c0_i32_0 = arith.constant 0 : i32
    %c0_i32_1 = arith.constant 0 : i32
    return %c0_i32, %c0_i32_0 : i32, i32
  }
}

</mosaic_0001>

<bundles_post_ra>
// kernel: tpu_custom_call.1
= control target key start
LH: loop header
LB: loop body
LE: loop exit
PB: predicated region body
PF: predicated region fallthrough
CT: control target
= control target key end

     0   :  { %7 = vsyncpa [#allocation4], 0  ;;  %s245_s0 = inlined_call_operand.hbm [shape: f32[16,128], index: 0, kind: input, shape index: {}]   ;;  %s246_s1 = inlined_call_operand.hbm [shape: f32[16,128], index: 1, kind: input, shape index: {}]   ;;  %s247_s2 = inlined_call_operand.hbm [shape: f32[1,1], index: 2, kind: output, shape index: {}]  }
   0x1   :  { %8 = vsyncpa [#allocation7], 0 }
   0x2   :  { %9 = vsyncpa [#allocation5], 0  ;;  %s189_s9 = smov [#allocation3]   ;;  %s129_s13 = scalar_lea.hbm %s245_s0, 256 }
   0x3   :  { %s15_s10 = sshll.u32 %s189_s9, 4  ;;  %p130_p0 = scmp.ne.s32.totalorder %s245_s0, %s129_s13  ;;  %s16_s10 = int_to_ptr.vmem [resolvable:$true] %s15_s10 }
   0x4   :  { %p133_p1 = scmp.lt.u32.totalorder %s129_s13, %s245_s0 }
   0x6   :  { %p135_p2 = pnand %p133_p1, %p130_p0 }
   0x8   :  { %138 = shalt.err (!%p135_p2)
}
   0x9   :  { %s139_s18 = scalar_lea.vmem %s16_s10, 256  ;;  %p144_p4 = scmp.lt.s32.totalorder %s16_s10, %s16_s10 }
   0xa   :  { %p140_p3 = scmp.ne.s32.totalorder %s16_s10, %s139_s18  ;;  %p145_p5 = scmp.lt.s32.totalorder %s139_s18, %s139_s18 }
   0xc   :  { %p146_p6 = por %p145_p5, %p144_p4 }
   0xe   :  { %p147_p7 = pnand %p146_p6, %p140_p3 }
  0x10   :  { %150 = shalt.err (!%p147_p7)
}
  0x11   :  { %s190_s19 = smov 128   ;;  %s191_s20 = smov 8  }
  0x12   :  { %21 = dma.hbm_to_vmem [thread:$0]  %s245_s0, 256, %s16_s10, [#allocation4], %s190_s19, %s190_s19, %s191_s20  }
  0x13   :  { %s192_s23 = smov [#allocation6]   ;;  %s151_s27 = scalar_lea.hbm %s246_s1, 256 }
  0x14   :  { %s27_s24 = sshll.u32 %s192_s23, 4  ;;  %p152_p8 = scmp.ne.s32.totalorder %s246_s1, %s151_s27  ;;  %s28_s24 = int_to_ptr.vmem [resolvable:$true] %s27_s24 }
  0x15   :  { %p155_p9 = scmp.lt.u32.totalorder %s151_s27, %s246_s1 }
  0x17   :  { %p157_p10 = pnand %p155_p9, %p152_p8 }
  0x19   :  { %160 = shalt.err (!%p157_p10)
}
  0x1a   :  { %s161_s4 = scalar_lea.vmem %s28_s24, 256  ;;  %p166_p12 = scmp.lt.s32.totalorder %s28_s24, %s28_s24 }
  0x1b   :  { %p162_p11 = scmp.ne.s32.totalorder %s28_s24, %s161_s4  ;;  %p167_p13 = scmp.lt.s32.totalorder %s161_s4, %s161_s4 }
  0x1d   :  { %p168_p0 = por %p167_p13, %p166_p12 }
  0x1f   :  { %p169_p1 = pnand %p168_p0, %p162_p11 }
  0x21   :  { %172 = shalt.err (!%p169_p1)
}
  0x22   :  { %33 = dma.hbm_to_vmem [thread:$0]  %s246_s1, 256, %s28_s24, [#allocation7], %s190_s19, %s190_s19, %s191_s20  }
  0x23   :  { %183 = dma.done.wait [#allocation4], 256  }
  0x24   :  { %184 = vsyncadd [#allocation4], 4294967040 }
  0x25   :  { %185 = dma.done.wait [#allocation7], 256  }
  0x26   :  { %186 = vsyncadd [#allocation7], 4294967040  ;;  %v47_v0 = vld [vmem:[#allocation6] sm:$0xff]  ;;  %v48_v1 = vld [vmem:[#allocation6 + $0x8] sm:$0xff]  ;;  %s173_s9 = scalar_lea.hbm %s247_s2, 16 }
  0x27   :  { %v114_v2 = vadd.f32 -19.0, %v47_v0  ;;  %v115_v3 = vadd.f32 -19.0, %v48_v1  ;;  %vm49_vm0 = vcmp.gt.f32.partialorder %v47_v0, 20.0  ;;  %v45_v12 = vld [vmem:[#allocation3] sm:$0xff]  ;;  %vm50_vm1 = vcmp.gt.f32.partialorder %v48_v1, 20.0  ;;  %v46_v14 = vld [vmem:[#allocation3 + $0x8] sm:$0xff]  ;;  %p174_p2 = scmp.ne.s32.totalorder %s247_s2, %s173_s9  ;;  %p177_p3 = scmp.lt.u32.totalorder %s173_s9, %s247_s2 }
  0x29   :  { %v53_v4 = vmax.f32 %v114_v2, 1.0  ;;  %v54_v5 = vmax.f32 %v115_v3, 1.0  ;;  %p179_p4 = pnand %p177_p3, %p174_p2 }
  0x2b   :  { %125 = vlog2.f32 %v53_v4 }
  0x2c   :  { %127 = vlog2.f32 %v54_v5 }
  0x35   :  { %v126_v6 = vpop.eup %125 }
  0x36   :  { %v128_v7 = vpop.eup %127  ;;  %v56_v8 = vmul.f32 0.6931472, %v126_v6 }
  0x37   :  { %v58_v9 = vmul.f32 0.6931472, %v128_v7 }
  0x38   :  { %v59_v10 = vmul.f32 0.21714725, %v56_v8 }
  0x39   :  { %v60_v11 = vmul.f32 0.21714725, %v58_v9 }
  0x3a   :  { %v61_v13 = vadd.f32 20.0, %v59_v10 }
  0x3b   :  { %v62_v15 = vadd.f32 20.0, %v60_v11 }
  0x3c   :  { %v63_v16 = vsel %vm49_vm0, %v61_v13, %v47_v0 }
  0x3d   :  { %v64_v17 = vsel %vm50_vm1, %v62_v15, %v48_v1  ;;  %v65_v18 = vsub.f32 %v45_v12, %v63_v16 }
  0x3e   :  { %v66_v19 = vsub.f32 %v46_v14, %v64_v17 }
  0x3f   :  { %v67_v20 = vand.u32 2147483647, %v65_v18 }
  0x40   :  { %v68_v21 = vand.u32 2147483647, %v66_v19 }
  0x41   :  { %v69_v22 = vmul.f32 0.5, %v67_v20  ;;  %v116_v23 = vadd.f32 -0.5, %v67_v20  ;;  %vm75_vm2 = vcmp.le.f32.partialorder %v67_v20, 1.0 }
  0x42   :  { %v70_v24 = vmul.f32 0.5, %v68_v21  ;;  %v117_v25 = vadd.f32 -0.5, %v68_v21  ;;  %vm76_vm3 = vcmp.le.f32.partialorder %v68_v21, 1.0 }
  0x43   :  { %v71_v26 = vmul.f32 %v69_v22, %v67_v20 }
  0x44   :  { %v72_v27 = vmul.f32 %v70_v24, %v68_v21 }
  0x45   :  { %v77_v28 = vsel %vm75_vm2, %v71_v26, %v116_v23 }
  0x46   :  { %v78_v29 = vsel %vm76_vm3, %v72_v27, %v117_v25 }
  0x47   :  { %v80_v30 = vadd.f32 %v78_v29, %v77_v28 }
  0x49   :  { %87 = vadd.xlane.f32.xlu0 %v80_v30 }
  0xd6   :  { %v88_v31 = vpop.xlane.xlu0 %87 }
  0xd7   :  { %v89_v32 = vrot.slane %v88_v31, 4 }
  0xd9   :  { %v90_v33 = vadd.f32 %v89_v32, %v88_v31 }
  0xdb   :  { %v91_v34 = vrot.slane %v90_v33, 2 }
  0xdd   :  { %v92_v35 = vadd.f32 %v91_v34, %v90_v33 }
  0xdf   :  { %v93_v36 = vrot.slane %v92_v35, 1 }
  0xe1   :  { %v94_v37 = vadd.f32 %v93_v36, %v92_v35 }
  0xe3   :  { %118 = vpush %v94_v37 }
 0x114   :  { %s119_s1 = spop %118 }
 0x115   :  { %s96_s6 = smul.f32 0.00048828125, %s119_s1 }
 0x117   :  { %98 = sst [smem:[#allocation8]] %s96_s6 }
 0x118   :  { %182 = shalt.err (!%p179_p4)
}
 0x119   :  { %s193_s14 = smov [#allocation8]  }
 0x11a   :  { %106 = dma.smem_to_hbm %s193_s14, 16, %s247_s2, [#allocation5]  }
 0x11b   :  { %187 = dma.done.wait [#allocation5], 16  }
 0x11c   :  { %188 = vsyncadd [#allocation5], 4294967280 }
 0x11d   :  { %110 = sfence }
 0x11e   :  { %111 = vsyncpa [#allocation4], 1 }
 0x11f   :  { %112 = vsyncpa [#allocation7], 1 }
 0x120   :  { %113 = vsyncpa [#allocation5], 1 }

</bundles_post_ra>
